<compile_context>
chip_gen: v5e
topology: v5e:2x2
jax: 0.10.0
libtpu: 0.0.40
codegen_flags: <defaults>
</compile_context>

<pallas_src>
import jax
import jax.numpy as jnp
from jax.experimental import pallas as pl
from jax.experimental.pallas import tpu as pltpu

_LANE = 128  # one 128-lane slab per agent head


def _round_up(x, m):
    return ((x + m - 1) // m) * m


# ----------------------------------------------------------------------------
# Kernel: one batch tile through the full MLP, selected agent head only.
# ----------------------------------------------------------------------------
def _mlp_head_kernel(aidx_ref,      # (1,) int32 scalar prefetch (used by index maps)
                     x_ref,         # (TB, IN)
                     w1_ref,        # (IN, H)
                     w2_ref,        # (H, H)
                     b12_ref,       # (2, H)   f32: row 0 = b1, row 1 = b2
                     w3_ref,        # (H, 128) selected head's weights (zero-padded past OUT)
                     b3_ref,        # (8, 128) selected head's bias in row 0
                     o_ref):        # (TB, 128)
    del aidx_ref  # head selection already happened in the BlockSpec index maps

    x = x_ref[...]

    # Layer 1: Linear + ReLU (f32 accumulation on the MXU)
    h1 = jnp.dot(x, w1_ref[...], preferred_element_type=jnp.float32)
    h1 = jnp.maximum(h1 + b12_ref[0:1, :], 0.0)

    # Layer 2: Linear + ReLU
    h2 = jnp.dot(h1.astype(w2_ref.dtype), w2_ref[...],
                 preferred_element_type=jnp.float32)
    h2 = jnp.maximum(h2 + b12_ref[1:2, :], 0.0)

    # Selected head: lane-dense 128-wide output tile -> unmasked vst path
    q = jnp.dot(h2.astype(w3_ref.dtype), w3_ref[...],
                preferred_element_type=jnp.float32)
    o_ref[...] = (q + b3_ref[0:1, :]).astype(o_ref.dtype)


# ----------------------------------------------------------------------------
# Parameter packing (done once, outside the hot path).
# ----------------------------------------------------------------------------
def pack_params(params, *, compute_dtype=jnp.float32):
    """Pack raw params into the kernel layout.

    Returns dict with:
      w1  (IN, H), w2 (H, H)          in `compute_dtype`
      b12 (2, H)                      f32 (row 0 = b1, row 1 = b2)
      w3  (H, A*128)                  per-head 128-lane slabs, zero padded past OUT
      b3  (A*8, 128)                  head a's bias in row a*8 (sublane-aligned blocks)
      plus static ints A, H, OUT and the compute dtype.
    """
    w1, b1, w2, b2, w3, b3 = (params["w1"], params["b1"], params["w2"],
                              params["b2"], params["w3"], params["b3"])
    A, H, OUT = w3.shape
    # TODO(synk): support output_size > 128 by using ceil(OUT/128) slabs per head.
    if OUT > _LANE:
        raise NotImplementedError("output_size > 128 not supported by this kernel")

    # One 128-lane slab per head: w3_slab[:, a*128 + o] = w3[a, :, o]
    w3_hao = jnp.pad(jnp.transpose(w3, (1, 0, 2)),
                     ((0, 0), (0, 0), (0, _LANE - OUT)))          # (H, A, 128)
    w3_slab = w3_hao.reshape(H, A * _LANE).astype(compute_dtype)

    # Bias slab: (A*8, 128), row a*8 holds head a's bias -> BlockSpec((8,128), (a,0))
    # is sublane-aligned and DMA-friendly.
    b3_row = jnp.pad(b3.reshape(A, OUT), ((0, 0), (0, _LANE - OUT))).astype(jnp.float32)
    b3_slab = (jnp.zeros((A, 8, _LANE), jnp.float32)
               .at[:, 0, :].set(b3_row)
               .reshape(A * 8, _LANE))

    b12 = jnp.concatenate([b1.reshape(1, H), b2.reshape(1, H)], axis=0).astype(jnp.float32)

    return {"w1": w1.astype(compute_dtype), "w2": w2.astype(compute_dtype),
            "b12": b12, "w3": w3_slab, "b3": b3_slab,
            "A": int(A), "H": int(H), "OUT": int(OUT),
            "dtype": jnp.dtype(compute_dtype)}


# ----------------------------------------------------------------------------
# Batch-tile selection.
# ----------------------------------------------------------------------------
def _pick_batch_tile(B, tb):
    Bp8 = _round_up(B, 8)
    if tb is None:
        tb = 2048  # double-buffered tiles ~2.5 MiB at IN=16: step overhead amortized
    tb = max(8, min(_round_up(tb, 8), Bp8))
    if tb >= Bp8 and Bp8 >= 16:
        # Whole batch would be a single grid step; split in two so the "parallel"
        # batch axis gives both v7x TensorCores work (no-op on v5e/v6e).
        tb = _round_up(pl.cdiv(Bp8, 2), 8)
    if B % tb != 0:
        # Prefer a divisor tile (>= tb/2) so the padded copy of `states` is skipped.
        for cand in range(tb, max(8, tb // 2) - 1, -8):
            if B % cand == 0:
                tb = cand
                break
    return tb


# ----------------------------------------------------------------------------
# Forward wrapper.
# ----------------------------------------------------------------------------
def ma_ps_dqn_forward(states, agent_idx, packed, *, tb=None):
    """states: (B, IN) float; agent_idx: python int or scalar int32.

    Returns (B, OUT) float32 Q-values for the selected agent head.
    """
    B, IN = states.shape
    H, A, OUT = packed["H"], packed["A"], packed["OUT"]
    dtype = packed["dtype"]

    tb = _pick_batch_tile(B, tb)
    Bp = _round_up(B, tb)

    x = states.astype(dtype)
    if Bp != B:
        x = jnp.pad(x, ((0, Bp - B), (0, 0)))

    # Clamp so an out-of-range agent_idx can never index outside the weight slab.
    aidx = jnp.clip(jnp.asarray(agent_idx, jnp.int32).reshape((1,)), 0, A - 1)

    grid = (Bp // tb,)

    q_pad = pl.pallas_call(
        _mlp_head_kernel,
        out_shape=jax.ShapeDtypeStruct((Bp, _LANE), jnp.float32),
        grid_spec=pltpu.PrefetchScalarGridSpec(
            num_scalar_prefetch=1,
            grid=grid,
            in_specs=[
                pl.BlockSpec((tb, IN), lambda i, a: (i, 0)),       # batch-tiled activations
                pl.BlockSpec((IN, H), lambda i, a: (0, 0)),        # weights stay VMEM-resident
                pl.BlockSpec((H, H), lambda i, a: (0, 0)),
                pl.BlockSpec((2, H), lambda i, a: (0, 0)),
                pl.BlockSpec((H, _LANE), lambda i, a: (0, a[0])),  # selected head's weights
                pl.BlockSpec((8, _LANE), lambda i, a: (a[0], 0)),  # selected head's bias
            ],
            out_specs=pl.BlockSpec((tb, _LANE), lambda i, a: (i, 0)),
        ),
        compiler_params=pltpu.CompilerParams(
            # batch tiles are independent -> shard across v7x's two TCs
            dimension_semantics=("parallel",)),
    )(aidx, x, packed["w1"], packed["w2"], packed["b12"], packed["w3"], packed["b3"])

    # Static slice: first OUT lanes hold the head's Q-values, first B rows are valid.
    return q_pad[:B, :OUT]


# ----------------------------------------------------------------------------
# Synthetic parameters + pure-JAX reference (matches the PyTorch module).
# ----------------------------------------------------------------------------
def init_params(key, num_agents, input_size, output_size, hidden=32):
    """Deterministic synthetic parameters (not a checkpoint load)."""
    ks = jax.random.split(key, 6)
    scale = 0.1
    return {
        "w1": scale * jax.random.normal(ks[0], (input_size, hidden), jnp.float32),
        "b1": scale * jax.random.normal(ks[1], (1, hidden), jnp.float32),
        "w2": scale * jax.random.normal(ks[2], (hidden, hidden), jnp.float32),
        "b2": scale * jax.random.normal(ks[3], (1, hidden), jnp.float32),
        "w3": scale * jax.random.normal(ks[4], (num_agents, hidden, output_size), jnp.float32),
        "b3": scale * jax.random.normal(ks[5], (num_agents, output_size), jnp.float32),
    }


def reference_forward(states, agent_idx, params):
    h1 = jnp.maximum(states @ params["w1"] + params["b1"], 0.0)
    h2 = jnp.maximum(h1 @ params["w2"] + params["b2"], 0.0)
    return h2 @ params["w3"][agent_idx] + params["b3"][agent_idx]


if __name__ == "__main__":
    key = jax.random.PRNGKey(0)
    k_params, k_states = jax.random.split(key)

    num_agents = 4
    input_size = 16
    output_size = 8
    batch = 64

    params = init_params(k_params, num_agents, input_size, output_size)
    states = jax.random.normal(k_states, (batch, input_size), jnp.float32)

    # --- f32 path: must match the reference to 1e-5 -------------------------
    packed = pack_params(params)

    q = jax.block_until_ready(ma_ps_dqn_forward(states, 2, packed))  # default tb -> 2 tiles
    q_ref = reference_forward(states, 2, params)
    assert q.shape == (batch, output_size)
    assert jnp.allclose(q, q_ref, atol=1e-5, rtol=1e-5), "mismatch vs JAX reference (agent 2)"

    # Different head + explicit small tile (exercises a grid=(4,) pipeline).
    q0 = jax.block_until_ready(ma_ps_dqn_forward(states, 0, packed, tb=16))
    assert jnp.allclose(q0, reference_forward(states, 0, params), atol=1e-5, rtol=1e-5)

    # Out-of-range agent index is clamped to the last head (documented behavior).
    q_clamp = jax.block_until_ready(ma_ps_dqn_forward(states, num_agents + 3, packed))
    assert jnp.allclose(q_clamp, reference_forward(states, num_agents - 1, params),
                        atol=1e-5, rtol=1e-5)

    # --- optional bf16 compute path (f32 accumulation / f32 output) ---------
    packed_bf16 = pack_params(params, compute_dtype=jnp.bfloat16)
    q_bf16 = jax.block_until_ready(ma_ps_dqn_forward(states, 2, packed_bf16))
    assert jnp.allclose(q_bf16, q_ref, atol=5e-2, rtol=5e-2), "bf16 path diverged too far"

    print("KERNEL_OK")
</pallas_src>

<mosaic_0001>
module attributes {stable_mosaic.version = 11 : i64} {
  func.func @_mlp_head_kernel(%arg0: i32, %arg1: memref<1xi32, #tpu.memory_space<smem>>, %arg2: memref<32x16xf32, #tpu.memory_space<vmem>>, %arg3: memref<16x32xf32, #tpu.memory_space<vmem>>, %arg4: memref<32x32xf32, #tpu.memory_space<vmem>>, %arg5: memref<2x32xf32, #tpu.memory_space<vmem>>, %arg6: memref<32x128xf32, #tpu.memory_space<vmem>>, %arg7: memref<8x128xf32, #tpu.memory_space<vmem>>, %arg8: memref<32x128xf32, #tpu.memory_space<vmem>>) attributes {dimension_semantics = [#tpu.dimension_semantics<parallel>], iteration_bounds = array<i64: 2>, scalar_prefetch = 1 : i64, scratch_operands = 0 : i64, tpu.core_type = #tpu.core_type<tc>, window_params = [{transform_indices = @transform_0, window_bounds = array<i64: 32, 16>}, {pipeline_mode = #tpu.pipeline_mode<synchronous>, transform_indices = @transform_1, window_bounds = array<i64: 16, 32>}, {pipeline_mode = #tpu.pipeline_mode<synchronous>, transform_indices = @transform_2, window_bounds = array<i64: 32, 32>}, {pipeline_mode = #tpu.pipeline_mode<synchronous>, transform_indices = @transform_3, window_bounds = array<i64: 2, 32>}, {transform_indices = @transform_4, window_bounds = array<i64: 32, 128>}, {transform_indices = @transform_5, window_bounds = array<i64: 8, 128>}, {transform_indices = @transform_6, window_bounds = array<i64: 32, 128>}]} {
    %c0 = arith.constant 0 : index
    %c0_0 = arith.constant 0 : index
    %0 = vector.load %arg2[%c0, %c0_0] : memref<32x16xf32, #tpu.memory_space<vmem>>, vector<32x16xf32>
    %c0_1 = arith.constant 0 : index
    %c0_2 = arith.constant 0 : index
    %1 = vector.load %arg3[%c0_1, %c0_2] : memref<16x32xf32, #tpu.memory_space<vmem>>, vector<16x32xf32>
    %cst = arith.constant dense<0.000000e+00> : vector<32x32xf32>
    %2 = tpu.matmul %0, %1, %cst {dimension_numbers = #tpu.dot_dimension_numbers<[1], [0], [0], [1], [0, 0, 1, 1], [], []>} : vector<32x16xf32>, vector<16x32xf32>, vector<32x32xf32> -> vector<32x32xf32>
    %c0_3 = arith.constant 0 : index
    %c0_4 = arith.constant 0 : index
    %3 = vector.load %arg5[%c0_3, %c0_4] : memref<2x32xf32, #tpu.memory_space<vmem>>, vector<1x32xf32>
    %4 = vector.broadcast %3 : vector<1x32xf32> to vector<32x32xf32>
    %5 = arith.addf %2, %4 : vector<32x32xf32>
    %cst_5 = arith.constant 0.000000e+00 : f32
    %6 = vector.broadcast %cst_5 : f32 to vector<32x32xf32>
    %7 = arith.maximumf %5, %6 : vector<32x32xf32>
    %c0_6 = arith.constant 0 : index
    %c0_7 = arith.constant 0 : index
    %8 = vector.load %arg4[%c0_6, %c0_7] : memref<32x32xf32, #tpu.memory_space<vmem>>, vector<32x32xf32>
    %cst_8 = arith.constant dense<0.000000e+00> : vector<32x32xf32>
    %9 = tpu.matmul %7, %8, %cst_8 {dimension_numbers = #tpu.dot_dimension_numbers<[1], [0], [0], [1], [0, 0, 1, 1], [], []>} : vector<32x32xf32>, vector<32x32xf32>, vector<32x32xf32> -> vector<32x32xf32>
    %c1 = arith.constant 1 : index
    %c0_9 = arith.constant 0 : index
    %10 = vector.load %arg5[%c1, %c0_9] : memref<2x32xf32, #tpu.memory_space<vmem>>, vector<1x32xf32>
    %11 = vector.broadcast %10 : vector<1x32xf32> to vector<32x32xf32>
    %12 = arith.addf %9, %11 : vector<32x32xf32>
    %cst_10 = arith.constant 0.000000e+00 : f32
    %13 = vector.broadcast %cst_10 : f32 to vector<32x32xf32>
    %14 = arith.maximumf %12, %13 : vector<32x32xf32>
    %c0_11 = arith.constant 0 : index
    %c0_12 = arith.constant 0 : index
    %15 = vector.load %arg6[%c0_11, %c0_12] : memref<32x128xf32, #tpu.memory_space<vmem>>, vector<32x128xf32>
    %cst_13 = arith.constant dense<0.000000e+00> : vector<32x128xf32>
    %16 = tpu.matmul %14, %15, %cst_13 {dimension_numbers = #tpu.dot_dimension_numbers<[1], [0], [0], [1], [0, 0, 1, 1], [], []>} : vector<32x32xf32>, vector<32x128xf32>, vector<32x128xf32> -> vector<32x128xf32>
    %c0_14 = arith.constant 0 : index
    %c0_15 = arith.constant 0 : index
    %17 = vector.load %arg7[%c0_14, %c0_15] : memref<8x128xf32, #tpu.memory_space<vmem>>, vector<1x128xf32>
    %18 = vector.broadcast %17 : vector<1x128xf32> to vector<32x128xf32>
    %19 = arith.addf %16, %18 : vector<32x128xf32>
    %c0_16 = arith.constant 0 : index
    %c0_17 = arith.constant 0 : index
    %20 = vector.load %arg8[%c0_16, %c0_17] : memref<32x128xf32, #tpu.memory_space<vmem>>, vector<32x128xf32>
    tpu.vector_store %arg8[%c0_16, %c0_17], %19 {strides = array<i32>} : memref<32x128xf32, #tpu.memory_space<vmem>>, vector<32x128xf32>,
    return
  }
  func.func @transform_0(%arg0: i32, %arg1: memref<1xi32, #tpu.memory_space<smem>>) -> (i32, i32) {
    %c0_i32 = arith.constant 0 : i32
    %c0_i32_0 = arith.constant 0 : i32
    return %arg0, %c0_i32 : i32, i32
  }
  func.func @transform_1(%arg0: i32, %arg1: memref<1xi32, #tpu.memory_space<smem>>) -> (i32, i32) {
    %c0_i32 = arith.constant 0 : i32
    %c0_i32_0 = arith.constant 0 : i32
    %c0_i32_1 = arith.constant 0 : i32
    return %c0_i32, %c0_i32_0 : i32, i32
  }
  func.func @transform_2(%arg0: i32, %arg1: memref<1xi32, #tpu.memory_space<smem>>) -> (i32, i32) {
    %c0_i32 = arith.constant 0 : i32
    %c0_i32_0 = arith.constant 0 : i32
    %c0_i32_1 = arith.constant 0 : i32
    return %c0_i32, %c0_i32_0 : i32, i32
  }
  func.func @transform_3(%arg0: i32, %arg1: memref<1xi32, #tpu.memory_space<smem>>) -> (i32, i32) {
    %c0_i32 = arith.constant 0 : i32
    %c0_i32_0 = arith.constant 0 : i32
    %c0_i32_1 = arith.constant 0 : i32
    return %c0_i32, %c0_i32_0 : i32, i32
  }
  func.func @transform_4(%arg0: i32, %arg1: memref<1xi32, #tpu.memory_space<smem>>) -> (i32, i32) {
    %c0 = arith.constant 0 : index
    %0 = memref.load %arg1[%c0] : memref<1xi32, #tpu.memory_space<smem>>
    %c0_i32 = arith.constant 0 : i32
    %c0_i32_0 = arith.constant 0 : i32
    return %c0_i32, %0 : i32, i32
  }
  func.func @transform_5(%arg0: i32, %arg1: memref<1xi32, #tpu.memory_space<smem>>) -> (i32, i32) {
    %c0 = arith.constant 0 : index
    %0 = memref.load %arg1[%c0] : memref<1xi32, #tpu.memory_space<smem>>
    %c0_i32 = arith.constant 0 : i32
    %c0_i32_0 = arith.constant 0 : i32
    return %0, %c0_i32 : i32, i32
  }
  func.func @transform_6(%arg0: i32, %arg1: memref<1xi32, #tpu.memory_space<smem>>) -> (i32, i32) {
    %c0_i32 = arith.constant 0 : i32
    %c0_i32_0 = arith.constant 0 : i32
    return %arg0, %c0_i32 : i32, i32
  }
}

</mosaic_0001>

<bundles_post_ra>
// kernel: tpu_custom_call.1
= control target key start
LH: loop header
LB: loop body
LE: loop exit
PB: predicated region body
PF: predicated region fallthrough
CT: control target
= control target key end

     0   :  { %s1020_s0 = inlined_call_operand.<no memory space> [shape: s32[1], index: 0, kind: input, shape index: {}]   ;;  %s1021_s1 = inlined_call_operand.vmem [shape: f32[64,16], index: 1, kind: input, shape index: {}]   ;;  %s1022_s2 = inlined_call_operand.vmem [shape: f32[16,32], index: 2, kind: input, shape index: {}]   ;;  %s1023_s3 = inlined_call_operand.vmem [shape: f32[32,32], index: 3, kind: input, shape index: {}]   ;;  %s1024_s4 = inlined_call_operand.vmem [shape: f32[2,32], index: 4, kind: input, shape index: {}]   ;;  %s1025_s5 = inlined_call_operand.hbm [shape: f32[32,512], index: 5, kind: input, shape index: {}]   ;;  %s1026_s6 = inlined_call_operand.vmem [shape: f32[32,128], index: 6, kind: input, shape index: {}]   ;;  %s1027_s7 = inlined_call_operand.hbm [shape: f32[64,128], index: 7, kind: output, shape index: {}]  }
   0x1   :  { %12 = sst [smem:[#allocation3]] %s1020_s0 }
   0x2   :  { %13 = vsyncpa [#allocation5], 0 }
   0x3   :  { %14 = vsyncpa [#allocation6], 0 }
   0x4   :  { %16 = vsyncpa [#allocation6 + $0x1], 0  ;;  %s851_s26 = smov 0   ;;  %s853_s27 = smov 0  }
   0x5   :  { %s855_s28 = smov 0   ;;  %s857_s29 = smov 0  }
   0x6   :  { %s859_s30 = smov 0   ;;  %s861_s8 = smov 0  }
   0x7 LB: > { %1029 = sst [smem:[#allocation10_spill]] %s796_s30  ;;  %s880_s0 = sadd.s32 4294967295, %s800_s8   ;;  %s800_s8 = sphi %s861_s8, %s1039_s8   ;;  %s796_s30 = sphi %s859_s30, %s1015_s30   ;;  %s792_s29 = sphi %s857_s29, %s1035_s29   ;;  %s788_s28 = sphi %s855_s28, %s1038_s28   ;;  %s784_s27 = sphi %s853_s27, %s1037_s27   ;;  %s780_s26 = sphi %s851_s26, %s1036_s26  }
   0x8   : > { %s571_s9 = sadd.s32 4294967294, %s800_s8   ;;  %s884_s10 = sadd.s32 1, %s800_s8  }
   0x9   : > { %s115_s11 = sld [smem:[#allocation3]]  ;;  %p133_p0 = scmp.ne.s32.totalorder %s796_s30, %s792_s29 }
   0xa   : > { %p134_p1 = scmp.eq.s32.totalorder %s880_s0, 0  ;;  %s171_s12 = ssub.s32 %s800_s8, %s884_s10 }
   0xb   : > { %p172_p2 = scmp.eq.s32.totalorder %s171_s12, 0  ;;  %s174_s13 = sadd.s32 1, %s788_s28 }
   0xc   : > { %p891_p3 = por %p134_p1, %p133_p0  ;;  %p184_p4 = scmp.ne.s32.totalorder %s788_s28, %s784_s27 }
   0xd   : > { %s898_s15 = scalar_select %p172_p2, %s788_s28, %s174_s13  }
   0xe   : > { %p185_p5 = scmp.eq.s32.totalorder %s880_s0, 1  ;;  %p190_p6 = scmp.ne.s32.totalorder %s784_s27, %s780_s26 }
   0xf   : > { %p191_p8 = scmp.eq.s32.totalorder %s571_s9, 1  ;;  %p572_p10 = scmp.ge.s32.totalorder %s800_s8, 1 }
  0x10   : > { %p903_p7 = por %p185_p5, %p184_p4  ;;  %p198_p11 = scmp.lt.s32.totalorder %s800_s8, 3 }
  0x11   : > { %p907_p9 = por %p191_p8, %p190_p6  ;;  %s573_s18 = sshll.u32 %s115_s11, 3 }
  0x12   : > { %s220_s21 = scalar_lea.hbm %s1025_s5, %s573_s18  ;;  %p916_p12 = pnand %p572_p10, %p198_p11 }
  0x13   : > { %s221_s23 = sshll.u32 %s220_s21, 4  ;;  %s802_s24 = smov [#allocation4]   ;;  %s222_s23 = int_to_ptr.hbm [resolvable:$true] %s221_s23 }
  0x14   : > { %s223_s25 = sshll.u32 %s802_s24, 4  ;;  %p610_p13 = pneg %p916_p12  ;;  %s224_s25 = int_to_ptr.vmem [resolvable:$true] %s223_s25 }
  0x15   : > { %s684_s9 = sshra.s32 %s222_s23, 4  ;;  %s691_s18 = scalar_lea.hbm %s1025_s5, 128  ;;  %s685_s9 = int_to_ptr.hbm [resolvable:$true] %s684_s9 }
  0x16   : > { %p924_p0 = pnand %p610_p13, %p891_p3  ;;  %s686_s11 = scalar_lea.hbm %s685_s9, 32 }
  0x17   : > { %p687_p1 = scmp.ne.s32.totalorder %s685_s9, %s686_s11  ;;  %p692_p6 = scmp.lt.s32.totalorder %s685_s9, %s1025_s5 }
  0x18   : > { %p688_p2 = pneg %p924_p0  ;;  %p693_p8 = scmp.lt.s32.totalorder %s691_s18, %s686_s11 }
  0x1a   : > { %p689_p4 = pnand %p688_p2, %p687_p1  ;;  %p694_p10 = por %p693_p8, %p692_p6 }
  0x1c   : > { %p690_p5 = pneg %p689_p4 }
  0x1e   : > { %p695_p11 = pnand %p694_p10, %p690_p5 }
  0x20   : > { %698 = shalt.err (!%p695_p11)
}
  0x21   : > { %s803_s21 = smov 512   ;;  %s804_s24 = smov 128  }
  0x22   : > { %s805_s30 = smov 8   ;;  %257 = sbr.rel (%p916_p12) target bundleno = 475 (0x1db), region = 44 }
  0x23   : > { %613 = dma.hbm_to_vmem [thread:$0]  (!%p924_p0), %s222_s23, 512, %s224_s25, [#allocation5], %s803_s21, %s804_s24, %s805_s30  }
  0x27   : > { %771 = dma.done.wait (%p891_p3), [#allocation5], 512  }
  0x28   : > { %773 = vsyncadd (%p891_p3), [#allocation5], 4294966784  ;;  %s577_s9 = sshll.u32 %s880_s0, 2  ;;  %v312_v0 = vld [vmem:[%s1022_s2 + $0x8] sm:$0xff]  ;;  %v311_v1 = vld [vmem:[%s1022_s2] sm:$0xff]  ;;  %vm315_vm0 = vcmask 130048  }
  0x29   : > { %p294_p13 = scmp.lt.s32.totalorder %s577_s9, 7  ;;  %342 = vmatpush.msra.mxu0 %v312_v0  ;;  %v364_v3 = vld [vmem:[%s1023_s3 + $0x18] sm:$0xff]  ;;  %v363_v7 = vld [vmem:[%s1023_s3 + $0x10] sm:$0xff]  ;;  %v362_v8 = vld [vmem:[%s1023_s3 + $0x8] sm:$0xff]  ;;  %vm367_vm1 = vcmask 261120   ;;  %s290_s19 = sand.u32 1, %s784_s27  }
  0x2a   : > { %392 = vmatpush.msra.mxu1 %v364_v3  ;;  %598 = vmatpush.msra.mxu3 %v364_v3  ;;  %v361_v9 = vld [vmem:[%s1023_s3] sm:$0xff]  ;;  %v416_v11 = vld [vmem:[#allocation4 + $0x18] sm:$0xff]  ;;  %v415_v24 = vld [vmem:[#allocation4 + $0x10] sm:$0xff]  ;;  %s576_s20 = sshll.u32 %s290_s19, 5  ;;  %s597_s24 = sshll.u32 %s880_s0, 5 }
  0x2b   : > { %s1041_s9 = smov (!%p294_p13, %s577_s9), 7  ;;  %343 = vmatpush.msra.mxu0 %v311_v1  ;;  %v681_v10 = vld [vmem:[%s1024_s4] ss:$0 sm:$0xff]  ;;  %602 = vmatpush.msra.mxu2 %v416_v11  ;;  %v414_v25 = vld [vmem:[#allocation4 + $0x8] sm:$0xff]  ;;  %v682_v27 = vld [vmem:[%s1024_s4 + $0x1] ss:$0 sm:$0xff]  ;;  %s476_s12 = scalar_lea.hbm %s1027_s7, %s597_s24 }
  0x2c   : > { %s578_s11 = sshll.u32 %s1041_s9, 3  ;;  %393 = vmatpush.msra.mxu1 %v363_v7  ;;  %599 = vmatpush.msra.mxu3 %v363_v7  ;;  %v413_v26 = vld [vmem:[#allocation4] sm:$0xff]  ;;  %s292_s21 = scalar_lea.vmem [#allocation7], %s576_s20 }
  0x2d   : > { %s297_s18 = scalar_lea.vmem %s1021_s1, %s578_s11  ;;  %603 = vmatpush.msra.mxu2 %v415_v24  ;;  %s477_s13 = sshll.u32 %s292_s21, 4  ;;  %s478_s13 = int_to_ptr.vmem [resolvable:$true] %s477_s13 }
  0x2e   : > { %v307_v2 = vld [vmem:[%s297_s18] sm:$0xff]  ;;  %v308_v4 = vld [vmem:[%s297_s18 + $0x8] sm:$0xff]  ;;  %v309_v5 = vld [vmem:[%s297_s18 + $0x10] sm:$0xff]  ;;  %394 = vmatpush.msra.mxu1 %v362_v8  ;;  %600 = vmatpush.msra.mxu3 %v362_v8  ;;  %s734_s14 = scalar_lea.hbm %s1027_s7, 64 }
  0x2f   : > { %580 = vmatmul.msk.f32.vlgmr.msra.gmra.mxu0 %vm315_vm0, %v307_v2  ;;  %v310_v6 = vld [vmem:[%s297_s18 + $0x18] sm:$0xff]  ;;  %s300_s18 = sld [smem:[#allocation3]]  ;;  %604 = vmatpush.msra.mxu2 %v414_v25 }
  0x30   : > { %395 = vmatpush.msra.mxu1 %v361_v9  ;;  %601 = vmatpush.msra.mxu3 %v361_v9 }
  0x31   : > { %605 = vmatpush.msra.mxu2 %v413_v26 }
  0x32   : > { %443 = vmatpush.msrb.mxu1 %v416_v11 }
  0x34   : > { %444 = vmatpush.msrb.mxu1 %v415_v24 }
  0x35   : > { %p301_p3 = scmp.lt.s32.totalorder %s300_s18, 3 }
  0x36   : > { %445 = vmatpush.msrb.mxu1 %v414_v25 }
  0x37   : > { %581 = vmatmul.msk.f32.gmra.mxu0 %vm315_vm0, %v308_v4  ;;  %s1043_s18 = smov (!%p301_p3, %s300_s18), 3 }
  0x38   : > { %s579_s29 = sshll.u32 %s1043_s18, 3  ;;  %446 = vmatpush.msrb.mxu1 %v413_v26  ;;  %s479_s18 = sshll.u32 %s476_s12, 4  ;;  %s480_s18 = int_to_ptr.hbm [resolvable:$true] %s479_s18 }
  0x39   : > { %s304_s23 = scalar_lea.vmem %s1026_s6, %s579_s29  ;;  %s465_s29 = scalar_lea.sflag [#allocation6], %s290_s19 }
  0x3a   : > { %v683_v40 = vld [vmem:[%s304_s23] ss:$0 sm:$0xff]  ;;  %s728_s30 = sshra.s32 %s480_s18, 4  ;;  %s729_s30 = int_to_ptr.hbm [resolvable:$true] %s728_s30 }
  0x3b   : > { %s730_s22 = scalar_lea.hbm %s729_s30, 32  ;;  %p735_p2 = scmp.lt.s32.totalorder %s729_s30, %s1027_s7 }
  0x3c   : > { %p731_p12 = scmp.ne.s32.totalorder %s729_s30, %s730_s22  ;;  %p736_p4 = scmp.lt.s32.totalorder %s734_s14, %s730_s22 }
  0x3e   : > { %p732_p0 = pnand %p731_p12, %p903_p7  ;;  %p737_p5 = por %p736_p4, %p735_p2 }
  0x3f   : > { %582 = vmatmul.msk.f32.gmra.mxu0 %vm315_vm0, %v309_v5 }
  0x40   : > { %p733_p1 = pneg %p732_p0 }
  0x42   : > { %p738_p6 = pnand %p737_p5, %p733_p1 }
  0x47   : > { %583 = vmatmul.msk.f32.gmra.mxu0 %vm315_vm0, %v310_v6 }
  0xac   : > { %v345_v12 = vpop.f32.mrf.mxu0 }
  0xad   : > { %v346_v13 = vadd.f32 %v681_v10, %v345_v12 }
  0xaf   : > { %v357_v14 = vmax.f32 %v346_v13, 0.0 }
  0xb1   : > { %584 = vmatmul.msk.f32.vlgmr.msra.gmra.mxu1 %vm367_vm1, %v357_v14 }
  0xb4   : > { %v348_v15 = vpop.f32.mrf.mxu0 }
  0xb5   : > { %v349_v16 = vadd.f32 %v681_v10, %v348_v15 }
  0xb7   : > { %v358_v17 = vmax.f32 %v349_v16, 0.0 }
  0xb9   : > { %585 = vmatmul.msk.f32.vlgmr.msra.gmra.mxu3 %vm367_vm1, %v358_v17 }
  0xbc   : > { %v351_v18 = vpop.f32.mrf.mxu0 }
  0xbd   : > { %v352_v19 = vadd.f32 %v681_v10, %v351_v18 }
  0xbf   : > { %v359_v20 = vmax.f32 %v352_v19, 0.0 }
  0xc1   : > { %586 = vmatmul.msk.f32.gmra.mxu3 %vm367_vm1, %v359_v20 }
  0xc4   : > { %v354_v21 = vpop.f32.mrf.mxu0 }
  0xc5   : > { %v355_v22 = vadd.f32 %v681_v10, %v354_v21 }
  0xc7   : > { %v360_v23 = vmax.f32 %v355_v22, 0.0 }
  0xc9   : > { %587 = vmatmul.msk.f32.gmra.mxu3 %vm367_vm1, %v360_v23 }
 0x12e   : > { %v397_v28 = vpop.f32.mrf.mxu1 }
 0x12f   : > { %v398_v29 = vadd.f32 %v682_v27, %v397_v28 }
 0x131   : > { %v409_v30 = vmax.f32 %v398_v29, 0.0 }
 0x133   : > { %588 = vmatmul.msk.f32.vlgmr.msrb.gmra.mxu1 %vm367_vm1, %v409_v30 }
 0x13c   : > { %v400_v31 = vpop.f32.mrf.mxu3 }
 0x13d   : > { %v401_v32 = vadd.f32 %v682_v27, %v400_v31 }
 0x13f   : > { %v410_v33 = vmax.f32 %v401_v32, 0.0 }
 0x141   : > { %589 = vmatmul.msk.f32.vlgmr.msra.gmra.mxu2 %vm367_vm1, %v410_v33 }
 0x144   : > { %v403_v34 = vpop.f32.mrf.mxu3 }
 0x145   : > { %v404_v35 = vadd.f32 %v682_v27, %v403_v34 }
 0x147   : > { %v411_v36 = vmax.f32 %v404_v35, 0.0 }
 0x149   : > { %590 = vmatmul.msk.f32.gmra.mxu2 %vm367_vm1, %v411_v36 }
 0x14c   : > { %v406_v37 = vpop.f32.mrf.mxu3 }
 0x14d   : > { %v407_v38 = vadd.f32 %v682_v27, %v406_v37 }
 0x14f   : > { %v412_v39 = vmax.f32 %v407_v38, 0.0 }
 0x151   : > { %591 = vmatmul.msk.f32.gmra.mxu2 %vm367_vm1, %v412_v39 }
 0x1b0   : > { %v448_v41 = vpop.f32.mrf.mxu1 }
 0x1b1   : > { %v449_v42 = vadd.f32 %v683_v40, %v448_v41 }
 0x1b3   : > { %460 = vst [vmem:[%s292_s21] sm:$0xff] %v449_v42 }
 0x1c4   : > { %v451_v43 = vpop.f32.mrf.mxu2 }
 0x1c5   : > { %v452_v44 = vadd.f32 %v683_v40, %v451_v43 }
 0x1c7   : > { %461 = vst [vmem:[%s292_s21 + $0x8] sm:$0xff] %v452_v44 }
 0x1cc   : > { %v454_v45 = vpop.f32.mrf.mxu2 }
 0x1cd   : > { %v455_v46 = vadd.f32 %v683_v40, %v454_v45 }
 0x1cf   : > { %462 = vst [vmem:[%s292_s21 + $0x10] sm:$0xff] %v455_v46 }
 0x1d4   : > { %v457_v47 = vpop.f32.mrf.mxu2 }
 0x1d5   : > { %v458_v48 = vadd.f32 %v683_v40, %v457_v47 }
 0x1d7   : > { %463 = vst [vmem:[%s292_s21 + $0x18] sm:$0xff] %v458_v48 }
 0x1d8   : > { %741 = shalt.err (!%p738_p6)
}
 0x1d9   : > { %s806_s19 = smov 128   ;;  %s807_s21 = smov 8  }
 0x1da   : > { %608 = dma.vmem_to_hbm [thread:$0]  (%p903_p7), %s478_s13, 512, %s480_s18, %s465_s29, %s806_s19, %s806_s19, %s807_s21  }
 0x1db PF: > { %p618_p8 = scmp.ge.s32.totalorder %s800_s8, 2  ;;  %s494_s24 = sand.u32 1, %s780_s26  }
 0x1dc   : > { %s495_s9 = scalar_lea.sflag [#allocation6], %s494_s24 }
 0x1dd   : > { %p615_p10 = pnand %p618_p8, %p907_p9 }
 0x1df   : > { %p616_p11 = pneg %p615_p10 }
 0x1e1   : > { %775 = dma.done.wait (%p616_p11), %s495_s9, 512  }
 0x1e2   : > { %777 = vsyncadd (%p616_p11), %s495_s9, 4294966784  ;;  %s1035_s29 = sld [smem:[#allocation10_spill]]  ;;  %p19_p13 = scmp.ge.s32.totalorder %s884_s10, 4  }
 0x1e3   : > { %s1036_s26 = smov %s784_s27  ;;  %s1037_s27 = smov %s788_s28 }
 0x1e4   : > { %s1038_s28 = smov %s898_s15  ;;  %s1015_s30 = smov 0  }
 0x1e5   : > { %s1039_s8 = smov %s884_s10  ;;  %21 = sbr.rel (!%p19_p13) target bundleno = 7 (0x7), region = 88 }
 0x1ea   :  { %501 = vsyncpa [#allocation5], 1 }
 0x1eb   :  { %503 = vsyncpa [#allocation5 + $0x1], 1 }
 0x1ec   :  { %504 = vsyncpa [#allocation6], 1 }
 0x1ed   :  { %506 = vsyncpa [#allocation6 + $0x1], 1 }

</bundles_post_ra>
